<compile_context>
chip_gen: v6e
topology: v6e:2x2x1
jax: 0.10.0
libtpu: 0.0.40
codegen_flags: <defaults>
</compile_context>

<pallas_src>
import functools

import jax
import jax.numpy as jnp
import numpy as np
from jax import lax
from jax.experimental import pallas as pl
from jax.experimental.pallas import tpu as pltpu

# ---- synthetic "config" (small shapes consistent with the module) -------------
BATCH = 2
NUM_REGIONS = 8          # v sequence length ("v" axis)
NUM_TOKENS = 8           # q sequence length ("q" axis)
IMG_FEAT_SIZE = 16
HIDDEN_SIZE = 32
BA_HIDDEN_SIZE = 32      # K
GLIMPSE = 4


def _round_up(x, m):
    return (x + m - 1) // m * m


def bc_kernel(x_ref, p_ref, out_ref, *, batch, regions, tokens, glimpse, k, fp):
    """Single invocation, whole problem resident in VMEM (no grid).

    x_ref : (B*(V+Q), FP)   rows 0..B*V-1 : [v_row | 1 | 0...]
                            rows B*V..    : [0...  | q_row | 1 | 0...]
    p_ref : (FP + G*V, 2K)  rows [0:FP)   : block-diag [[wv;bv], 0 / 0, [wq;bq]]
                            rows [FP:)    : lanes [0:K) = h_mat tiled over regions,
                                            lane   K    = h_bias tiled over regions
    out_ref: (B, G*V, Q)    out[b, g*V + v, q] == logits[b, g, v, q]
    """
    x = x_ref[...]                                   # (B*(V+Q), FP)
    w = p_ref[:fp, :]                                # (FP, 2K)  block-diag weights
    consts = p_ref[fp:, :]                           # (G*V, 2K) constants slab
    hmat_t = consts[:, :k]                           # (G*V, K)  h_mat[g] per region row
    hbias_c = consts[:, k:k + 1]                     # (G*V, 1)  h_bias[g] per region row

    # Fused v_net / q_net: one MXU push covers both weight-normed Linears, the
    # ones column folds the biases, one ReLU covers both.  v rows land in lanes
    # [0:K), q rows in lanes [K:2K); off-diagonal halves are exact zeros.
    proj = jnp.maximum(
        jnp.dot(x, w, preferred_element_type=jnp.float32), 0.0)   # (B*(V+Q), 2K)

    nv = batch * regions
    for b in range(batch):                            # static, tiny B
        v_b = proj[b * regions:(b + 1) * regions, :k]                        # (V, K)
        q_b = proj[nv + b * tokens:nv + (b + 1) * tokens, k:2 * k]           # (Q, K)
        # weighted[g*V + v, k'] = h_mat[g, k'] * v_[v, k']  (h_mat broadcast pre-tiled)
        weighted = hmat_t * jnp.tile(v_b, (glimpse, 1))                      # (G*V, K)
        # res[g*V + v, q'] = sum_k' weighted[g*V+v, k'] * q_[q', k']  (no transpose)
        res = lax.dot_general(weighted, q_b,
                              dimension_numbers=(((1,), (1,)), ((), ())),
                              preferred_element_type=jnp.float32)            # (G*V, Q)
        out_ref[b, :, :] = res + hbias_c              # direct slab store, no stack


def bc_forward(v, q, params):
    B, V, F = v.shape
    _, Q, H = q.shape
    K = params["wv"].shape[1]
    G = params["h_mat"].shape[0]
    f32 = jnp.float32

    fa, ha = F + 1, H + 1                      # +1 ones column (bias folding)
    fp = _round_up(fa + ha, 8)                 # sublane-aligned fused feature dim

    # ---- input slab: block-diagonal [v | 1 | 0] over [0 | q | 1] rows ----------
    xv = jnp.concatenate(
        [v.reshape(B * V, F), jnp.ones((B * V, 1), f32),
         jnp.zeros((B * V, fp - fa), f32)], axis=1)
    xq = jnp.concatenate(
        [jnp.zeros((B * Q, fa), f32), q.reshape(B * Q, H),
         jnp.ones((B * Q, 1), f32), jnp.zeros((B * Q, fp - fa - ha), f32)], axis=1)
    x = jnp.concatenate([xv, xq], axis=0)                           # (B*(V+Q), FP)

    # ---- parameter slab: block-diag [wv;bv]/[wq;bq] stacked over constants -----
    w = jnp.zeros((fp, 2 * K), f32)
    w = w.at[:fa, :K].set(jnp.concatenate([params["wv"], params["bv"]], axis=0))
    w = w.at[fa:fa + ha, K:].set(jnp.concatenate([params["wq"], params["bq"]], axis=0))
    hmat_t = jnp.repeat(params["h_mat"], V, axis=0)                 # (G*V, K)
    hbias_c = jnp.repeat(params["h_bias"], V, axis=0)               # (G*V, 1)
    consts = jnp.concatenate(
        [hmat_t, hbias_c, jnp.zeros((G * V, K - 1), f32)], axis=1)  # (G*V, 2K)
    p = jnp.concatenate([w, consts], axis=0)                        # (FP + G*V, 2K)

    out = pl.pallas_call(
        functools.partial(bc_kernel, batch=B, regions=V, tokens=Q,
                          glimpse=G, k=K, fp=fp),
        out_shape=jax.ShapeDtypeStruct((B, G * V, Q), f32),
        in_specs=[pl.BlockSpec(memory_space=pltpu.MemorySpace.VMEM),
                  pl.BlockSpec(memory_space=pltpu.MemorySpace.VMEM)],
        out_specs=pl.BlockSpec(memory_space=pltpu.MemorySpace.VMEM),
    )(x, p)

    # (B, G*V, Q) -> (B, G, V, Q) == torch 'bhvq'; pure row-major reshape, no transpose.
    return out.reshape(B, G, V, Q)


def weight_norm_effective(w_raw, g):
    # nn.utils.weight_norm(..., dim=None): W_eff = g * W_raw / ||W_raw||_F (scalar norm)
    return g * w_raw / jnp.linalg.norm(w_raw)


def make_params(key):
    ks = jax.random.split(key, 6)
    # Linear weights stored as (in, out) for the in-kernel x @ W matmul.
    wv_raw = jax.random.normal(ks[0], (IMG_FEAT_SIZE, BA_HIDDEN_SIZE), jnp.float32) * 0.1
    wq_raw = jax.random.normal(ks[1], (HIDDEN_SIZE, BA_HIDDEN_SIZE), jnp.float32) * 0.1
    # weight_norm init sets g = ||W_raw||, reproduce that deterministically.
    wv = weight_norm_effective(wv_raw, jnp.linalg.norm(wv_raw))
    wq = weight_norm_effective(wq_raw, jnp.linalg.norm(wq_raw))
    bv = jax.random.normal(ks[2], (1, BA_HIDDEN_SIZE), jnp.float32) * 0.1
    bq = jax.random.normal(ks[3], (1, BA_HIDDEN_SIZE), jnp.float32) * 0.1
    # h_mat: torch shape (1, G, 1, K) ~ N(0,1); stored squeezed as (G, K).
    h_mat = jax.random.normal(ks[4], (GLIMPSE, BA_HIDDEN_SIZE), jnp.float32)
    # h_bias: torch shape (1, G, 1, 1); stored as (G, 1).
    h_bias = jax.random.normal(ks[5], (GLIMPSE, 1), jnp.float32)
    return dict(wv=wv, bv=bv, wq=wq, bq=bq, h_mat=h_mat, h_bias=h_bias)


def bc_reference(v, q, p):
    hi = lax.Precision.HIGHEST
    v_ = jnp.maximum(jnp.einsum("bvf,fk->bvk", v, p["wv"], precision=hi) + p["bv"][0], 0.0)
    q_ = jnp.maximum(jnp.einsum("bqh,hk->bqk", q, p["wq"], precision=hi) + p["bq"][0], 0.0)
    logits = jnp.einsum("gk,bvk,bqk->bgvq", p["h_mat"], v_, q_, precision=hi)
    return logits + p["h_bias"].reshape(1, GLIMPSE, 1, 1)


if __name__ == "__main__":
    key = jax.random.PRNGKey(0)
    kp, kv, kq = jax.random.split(key, 3)
    params = make_params(kp)

    v = jax.random.normal(kv, (BATCH, NUM_REGIONS, IMG_FEAT_SIZE), jnp.float32)
    q = jax.random.normal(kq, (BATCH, NUM_TOKENS, HIDDEN_SIZE), jnp.float32)

    out = bc_forward(v, q, params)
    out = jax.block_until_ready(out)

    ref = jax.block_until_ready(bc_reference(v, q, params))
    np.testing.assert_allclose(np.asarray(out), np.asarray(ref), rtol=1e-4, atol=1e-5)

    print("KERNEL_OK")
</pallas_src>

<mosaic_0001>
module attributes {stable_mosaic.version = 11 : i64} {
  func.func @bc_kernel(%arg0: memref<32x56xf32, #tpu.memory_space<vmem>>, %arg1: memref<88x64xf32, #tpu.memory_space<vmem>>, %arg2: memref<2x32x8xf32, #tpu.memory_space<vmem>>) attributes {dimension_semantics = [], scalar_prefetch = 0 : i64, scratch_operands = 0 : i64, tpu.core_type = #tpu.core_type<tc>} {
    %c0 = arith.constant 0 : index
    %c0_0 = arith.constant 0 : index
    %0 = vector.load %arg0[%c0, %c0_0] : memref<32x56xf32, #tpu.memory_space<vmem>>, vector<32x56xf32>
    %c0_1 = arith.constant 0 : index
    %c0_2 = arith.constant 0 : index
    %1 = vector.load %arg1[%c0_1, %c0_2] : memref<88x64xf32, #tpu.memory_space<vmem>>, vector<56x64xf32>
    %c56 = arith.constant 56 : index
    %c0_3 = arith.constant 0 : index
    %2 = vector.load %arg1[%c56, %c0_3] : memref<88x64xf32, #tpu.memory_space<vmem>>, vector<32x64xf32>
    %3 = vector.extract_strided_slice %2 {offsets = [0, 0], sizes = [32, 32], strides = [1, 1]} : vector<32x64xf32> to vector<32x32xf32>
    %4 = vector.extract_strided_slice %2 {offsets = [0, 32], sizes = [32, 1], strides = [1, 1]} : vector<32x64xf32> to vector<32x1xf32>
    %cst = arith.constant dense<0.000000e+00> : vector<32x64xf32>
    %5 = tpu.matmul %0, %1, %cst {dimension_numbers = #tpu.dot_dimension_numbers<[1], [0], [0], [1], [0, 0, 1, 1], [], []>} : vector<32x56xf32>, vector<56x64xf32>, vector<32x64xf32> -> vector<32x64xf32>
    %cst_4 = arith.constant 0.000000e+00 : f32
    %6 = vector.broadcast %cst_4 : f32 to vector<32x64xf32>
    %7 = arith.maximumf %5, %6 : vector<32x64xf32>
    %8 = vector.extract_strided_slice %7 {offsets = [0, 0], sizes = [8, 32], strides = [1, 1]} : vector<32x64xf32> to vector<8x32xf32>
    %9 = vector.extract_strided_slice %7 {offsets = [16, 32], sizes = [8, 32], strides = [1, 1]} : vector<32x64xf32> to vector<8x32xf32>
    %10 = tpu.concatenate %8, %8, %8, %8 in 0 : vector<8x32xf32>, vector<8x32xf32>, vector<8x32xf32>, vector<8x32xf32> -> vector<32x32xf32>
    %11 = arith.mulf %3, %10 : vector<32x32xf32>
    %cst_5 = arith.constant dense<0.000000e+00> : vector<32x8xf32>
    %12 = tpu.matmul %11, %9, %cst_5 {dimension_numbers = #tpu.dot_dimension_numbers<[1], [1], [0], [0], [0, 0, 1, 0], [], []>} : vector<32x32xf32>, vector<8x32xf32>, vector<32x8xf32> -> vector<32x8xf32>
    %13 = vector.broadcast %4 : vector<32x1xf32> to vector<32x8xf32>
    %14 = arith.addf %12, %13 : vector<32x8xf32>
    %c0_6 = arith.constant 0 : index
    %c0_7 = arith.constant 0 : index
    %c0_8 = arith.constant 0 : index
    %15 = vector.load %arg2[%c0_6, %c0_7, %c0_8] : memref<2x32x8xf32, #tpu.memory_space<vmem>>, vector<1x32x8xf32>
    %16 = vector.shape_cast %15 : vector<1x32x8xf32> to vector<32x8xf32>
    %17 = vector.shape_cast %14 : vector<32x8xf32> to vector<1x32x8xf32>
    tpu.vector_store %arg2[%c0_6, %c0_7, %c0_8], %17 {strides = array<i32>} : memref<2x32x8xf32, #tpu.memory_space<vmem>>, vector<1x32x8xf32>,
    %18 = vector.extract_strided_slice %7 {offsets = [8, 0], sizes = [8, 32], strides = [1, 1]} : vector<32x64xf32> to vector<8x32xf32>
    %19 = vector.extract_strided_slice %7 {offsets = [24, 32], sizes = [8, 32], strides = [1, 1]} : vector<32x64xf32> to vector<8x32xf32>
    %20 = tpu.concatenate %18, %18, %18, %18 in 0 : vector<8x32xf32>, vector<8x32xf32>, vector<8x32xf32>, vector<8x32xf32> -> vector<32x32xf32>
    %21 = arith.mulf %3, %20 : vector<32x32xf32>
    %cst_9 = arith.constant dense<0.000000e+00> : vector<32x8xf32>
    %22 = tpu.matmul %21, %19, %cst_9 {dimension_numbers = #tpu.dot_dimension_numbers<[1], [1], [0], [0], [0, 0, 1, 0], [], []>} : vector<32x32xf32>, vector<8x32xf32>, vector<32x8xf32> -> vector<32x8xf32>
    %23 = vector.broadcast %4 : vector<32x1xf32> to vector<32x8xf32>
    %24 = arith.addf %22, %23 : vector<32x8xf32>
    %c1 = arith.constant 1 : index
    %c0_10 = arith.constant 0 : index
    %c0_11 = arith.constant 0 : index
    %25 = vector.load %arg2[%c1, %c0_10, %c0_11] : memref<2x32x8xf32, #tpu.memory_space<vmem>>, vector<1x32x8xf32>
    %26 = vector.shape_cast %25 : vector<1x32x8xf32> to vector<32x8xf32>
    %27 = vector.shape_cast %24 : vector<32x8xf32> to vector<1x32x8xf32>
    tpu.vector_store %arg2[%c1, %c0_10, %c0_11], %27 {strides = array<i32>} : memref<2x32x8xf32, #tpu.memory_space<vmem>>, vector<1x32x8xf32>,
    return
  }
}

</mosaic_0001>

<bundles_post_ra>
// kernel: tpu_custom_call.1
= control target key start
LH: loop header
LB: loop body
LE: loop exit
PB: predicated region body
PF: predicated region fallthrough
CT: control target
= control target key end

     0   :  { %vm26_vm0 = vcmask 457728   ;;  %vm155_vm1 = vcmask 261120   ;;  %v455_v31 = vmov 32   ;;  %vm255_vm2 = vcmask 64512   ;;  %s564_s1 = inlined_call_operand.vmem [shape: f32[88,64], index: 1, kind: input, shape index: {}]   ;;  %s565_s0 = inlined_call_operand.vmem [shape: f32[32,56], index: 0, kind: input, shape index: {}]   ;;  %s566_s2 = inlined_call_operand.vmem [shape: f32[2,32,8], index: 2, kind: output, shape index: {}]  }
   0x1   :  { %v21_v0 = vld [vmem:[%s564_s1 + $0x30] sm:$0xff]  ;;  %v20_v1 = vld [vmem:[%s564_s1 + $0x28] sm:$0xff]  ;;  %v19_v2 = vld [vmem:[%s564_s1 + $0x20] sm:$0xff]  ;;  %452 = vset.pattern.permute.xlu1 %v455_v31  ;;  %453 = vset.pattern.permute.xlu0 %v455_v31 }
   0x2   :  { %414 = vmatprep.subr.mxu0 %v21_v0  ;;  %v11_v3 = vld [vmem:[%s565_s0] sm:$0xff]  ;;  %v18_v4 = vld [vmem:[%s564_s1 + $0x18] sm:$0xff]  ;;  %v17_v5 = vld [vmem:[%s564_s1 + $0x10] sm:$0xff] }
   0x3   :  { %415 = vmatpush3.msra.mxu0 %v21_v0  ;;  %428 = vmatprep.mubr.msk.f32.mxu0 %vm26_vm0, %v11_v3  ;;  %v16_v6 = vld [vmem:[%s564_s1 + $0x8] sm:$0xff]  ;;  %v15_v7 = vld [vmem:[%s564_s1] sm:$0xff]  ;;  %v13_v9 = vld [vmem:[%s565_s0 + $0x10] sm:$0xff] }
   0x4   :  { %416 = vmatprep.subr.mxu0 %v20_v1  ;;  %v12_v8 = vld [vmem:[%s565_s0 + $0x8] sm:$0xff]  ;;  %v14_v10 = vld [vmem:[%s565_s0 + $0x18] sm:$0xff]  ;;  %v23_v11 = vld [vmem:[%s564_s1 + $0x40] sm:$0xff]  ;;  %s454_s0 = smov 96  }
   0x5   :  { %417 = vmatpush3.msra.mxu0 %v20_v1  ;;  %v22_v13 = vld [vmem:[%s564_s1 + $0x38] sm:$0xff]  ;;  %v24_v14 = vld [vmem:[%s564_s1 + $0x48] sm:$0xff]  ;;  %v25_v16 = vld [vmem:[%s564_s1 + $0x50] sm:$0xff] }
   0x6   :  { %418 = vmatprep.subr.mxu0 %v19_v2  ;;  %134 = vperm.xlu1 %452, %v22_v13  }
   0x7   :  { %419 = vmatpush3.msra.mxu0 %v19_v2 }
   0x8   :  { %420 = vmatprep.subr.mxu0 %v18_v4 }
   0x9   :  { %421 = vmatpush3.msra.mxu0 %v18_v4 }
   0xa   :  { %422 = vmatprep.subr.mxu0 %v17_v5  ;;  %139 = vperm.xlu1 %452, %v23_v11  }
   0xb   :  { %423 = vmatpush3.msra.mxu0 %v17_v5 }
   0xc   :  { %424 = vmatprep.subr.mxu0 %v16_v6 }
   0xd   :  { %425 = vmatpush3.msra.mxu0 %v16_v6 }
   0xe   :  { %426 = vmatprep.subr.mxu0 %v15_v7  ;;  %149 = vperm.xlu1 %452, %v25_v16  }
   0xf   :  { %427 = vmatpush3.msra.mxu0 %v15_v7 }
  0x10   :  { %429 = vmatmul.mubr.msk.f32.vlgmr.msra.gmra.mxu0 %vm26_vm0, %v12_v8 }
  0x11   :  { %431 = vmatprep.mubr.msk.f32.mxu0 %vm26_vm0, %v13_v9 }
  0x14   :  { %432 = vmatmul.mubr.msk.f32.gmra.mxu0 %vm26_vm0, %v14_v10 }
  0x81   :  { %v135_v34 = vpop.permute.xlu1 %134 }
  0x85   :  { %v140_v35 = vpop.permute.xlu1 %139 }
  0x89   :  { %v150_v39 = vpop.permute.xlu1 %149 }
  0xd0   :  { %v430_v12 = vpop.f32.mrf.mxu0 }
  0xd1   :  { %v125_v15 = vmax.f32 %v430_v12, 0.0 }
  0xd2   :  { %v105_v17 = vpop.f32.mrf.mxu0 }
  0xd3   :  { %v261_v18 = vmul.f32 %v125_v15, %v23_v11  ;;  %v124_v19 = vmax.f32 %v105_v17, 0.0  ;;  %v260_v20 = vmul.f32 %v125_v15, %v22_v13  ;;  %v262_v21 = vmul.f32 %v125_v15, %v24_v14 }
  0xd4   :  { %v433_v22 = vpop.f32.mrf.mxu0  ;;  %v263_v23 = vmul.f32 %v125_v15, %v25_v16 }
  0xd5   :  { %v128_v24 = vmul.f32 %v124_v19, %v22_v13  ;;  %v129_v25 = vmul.f32 %v124_v19, %v23_v11  ;;  %v130_v26 = vmul.f32 %v124_v19, %v24_v14  ;;  %v131_v28 = vmul.f32 %v124_v19, %v25_v16 }
  0xd6   :  { %v115_v27 = vpop.f32.mrf.mxu0  ;;  %v127_v30 = vmax.f32 %v433_v22, 0.0 }
  0xd7   :  { %v126_v29 = vmax.f32 %v115_v27, 0.0  ;;  %436 = vmatprep.mubr.msk.f32.mxu1 %vm155_vm1, %v128_v24 }
  0xd9   :  { %153 = vrot.lane.b32.xlu0 %v126_v29, %s454_s0 }
  0xdd   :  { %265 = vrot.lane.b32.xlu0 %v127_v30, %s454_s0 }
  0xe1   :  { %144 = vperm.xlu0 %453, %v24_v14  }
 0x14b   :  { %v154_v32 = vpop.permute.xlu0 %153 }
 0x14c   :  { %434 = vmatprep.subr.msk.mxu1 %vm155_vm1, %v154_v32 }
 0x14d   :  { %435 = vmatpush3.xpose.msk.msra.mxu1 %vm155_vm1, %v154_v32 }
 0x14f   :  { %v266_v33 = vpop.permute.xlu0 %265 }
 0x150   :  { %437 = vmatmul.mubr.msk.f32.vlgmr.msra.gmra.mxu1 %vm155_vm1, %v129_v25  ;;  %442 = vmatprep.subr.msk.mxu1 %vm155_vm1, %v266_v33 }
 0x151   :  { %439 = vmatprep.mubr.msk.f32.mxu1 %vm155_vm1, %v130_v26  ;;  %443 = vmatpush3.xpose.msk.msra.mxu1 %vm155_vm1, %v266_v33 }
 0x154   :  { %440 = vmatmul.mubr.msk.f32.gmra.mxu1 %vm155_vm1, %v131_v28 }
 0x155   :  { %444 = vmatprep.mubr.msk.f32.mxu1 %vm155_vm1, %v260_v20 }
 0x158   :  { %445 = vmatmul.mubr.msk.f32.vlgmr.msra.gmra.mxu1 %vm155_vm1, %v261_v18 }
 0x159   :  { %447 = vmatprep.mubr.msk.f32.mxu1 %vm155_vm1, %v262_v21 }
 0x15c   :  { %448 = vmatmul.mubr.msk.f32.gmra.mxu1 %vm155_vm1, %v263_v23  ;;  %v145_v42 = vpop.permute.xlu0 %144 }
 0x210   :  { %v438_v36 = vpop.f32.mrf.mxu1 }
 0x211   :  { %v242_v37 = vadd.f32 %v438_v36, %v140_v35 }
 0x212   :  { %v236_v38 = vpop.f32.mrf.mxu1 }
 0x213   :  { %257 = vst.msk [vmem:[%s566_s2 + $0x8] sm:$0xff] %vm255_vm2, %v242_v37  ;;  %v237_v40 = vadd.f32 %v236_v38, %v135_v34 }
 0x214   :  { %v441_v41 = vpop.f32.mrf.mxu1 }
 0x215   :  { %256 = vst.msk [vmem:[%s566_s2] sm:$0xff] %vm255_vm2, %v237_v40  ;;  %v252_v43 = vadd.f32 %v441_v41, %v150_v39 }
 0x216   :  { %v246_v44 = vpop.f32.mrf.mxu1 }
 0x217   :  { %259 = vst.msk [vmem:[%s566_s2 + $0x18] sm:$0xff] %vm255_vm2, %v252_v43  ;;  %v247_v45 = vadd.f32 %v246_v44, %v145_v42 }
 0x218   :  { %v446_v46 = vpop.f32.mrf.mxu1 }
 0x219   :  { %258 = vst.msk [vmem:[%s566_s2 + $0x10] sm:$0xff] %vm255_vm2, %v247_v45  ;;  %v353_v47 = vadd.f32 %v446_v46, %v140_v35 }
 0x21a   :  { %v347_v48 = vpop.f32.mrf.mxu1 }
 0x21b   :  { %390 = vst.msk [vmem:[%s566_s2 + $0x28] sm:$0xff] %vm255_vm2, %v353_v47  ;;  %v348_v49 = vadd.f32 %v347_v48, %v135_v34 }
 0x21c   :  { %v449_v50 = vpop.f32.mrf.mxu1 }
 0x21d   :  { %389 = vst.msk [vmem:[%s566_s2 + $0x20] sm:$0xff] %vm255_vm2, %v348_v49  ;;  %v363_v51 = vadd.f32 %v449_v50, %v150_v39 }
 0x21e   :  { %v357_v52 = vpop.f32.mrf.mxu1 }
 0x21f   :  { %392 = vst.msk [vmem:[%s566_s2 + $0x38] sm:$0xff] %vm255_vm2, %v363_v51  ;;  %v358_v53 = vadd.f32 %v357_v52, %v145_v42 }
 0x221   :  { %391 = vst.msk [vmem:[%s566_s2 + $0x30] sm:$0xff] %vm255_vm2, %v358_v53 }

</bundles_post_ra>
